<compile_context>
chip_gen: v7x
topology: tpu7x:2x2x1
jax: 0.10.0
libtpu: 0.0.40
codegen_flags: <defaults>
</compile_context>

<pallas_src>
import functools
import math

import jax
import jax.numpy as jnp
from jax.experimental import pallas as pl
from jax.experimental.pallas import tpu as pltpu

EPS = 1e-5                      # torch nn.LayerNorm default
_INV_SQRT2 = 0.7071067811865476


def _layernorm(h, gamma, beta):
    # Fused single-sweep statistics: var = E[h^2] - mu^2 (f32 is fine at LN scales).
    mu = jnp.mean(h, axis=-1, keepdims=True)
    ms = jnp.mean(h * h, axis=-1, keepdims=True)
    var = jnp.maximum(ms - mu * mu, 0.0)
    return (h - mu) * jax.lax.rsqrt(var + EPS) * gamma + beta


def memory_kernel(x_ref, lng_ref, lnb_ref, w1_ref, b1_ref, w2_ref, b2_ref,
                  fg_ref, fb_ref, o_ref, *, weights_resident):
    l = pl.program_id(1)                       # layer index (innermost grid axis)

    # First layer step for this row tile: seed the resident accumulator.
    @pl.when(l == 0)
    def _():
        o_ref[...] = x_ref[...]

    h = o_ref[...]                             # (TM, D) f32

    # LayerNorm with per-layer affine params (VMEM-resident, indexed by l).
    xn = _layernorm(h, lng_ref[l], lnb_ref[l])

    # Weights: VMEM-resident full stacks indexed by l, or per-layer streamed block.
    w1 = w1_ref[l] if weights_resident else w1_ref[...]   # (D, H) bf16
    w2 = w2_ref[l] if weights_resident else w2_ref[...]   # (H, D) bf16

    # Linear(D -> H): bf16 MXU inputs, f32 accumulation; exact-erf GELU
    # (matches torch nn.GELU default).
    a = jnp.dot(xn.astype(jnp.bfloat16), w1,
                preferred_element_type=jnp.float32) + b1_ref[l]
    a = 0.5 * a * (1.0 + jax.lax.erf(a * jnp.float32(_INV_SQRT2)))

    # Linear(H -> D): bf16 MXU inputs, f32 accumulation.
    y = jnp.dot(a.astype(jnp.bfloat16), w2,
                preferred_element_type=jnp.float32) + b2_ref[l]

    # TODO(synk): nn.Dropout(0.1) is identity in eval mode; training-mode dropout not implemented.
    o_ref[...] = h + y                         # f32 residual add

    # Last layer step: apply the final LayerNorm in place.
    @pl.when(l == pl.num_programs(1) - 1)
    def _():
        o_ref[...] = _layernorm(o_ref[...], fg_ref[...], fb_ref[...])


def _round_up(a, m):
    return (a + m - 1) // m * m


def _vmem_capacity_bytes():
    try:
        return int(pltpu.get_tpu_info().vmem_capacity_bytes)
    except Exception:
        return 64 * 1024 * 1024                # conservative (v7x per-core VMEM)


def memory_module_forward(x, params, *, row_tile=None):
    B, S, D = x.shape
    N = B * S
    n_layers, _, H = params["w1"].shape

    # Per-generation VMEM budget: leave ~16 MiB headroom (=> ~48 MiB usable on
    # v7x, ~112 MiB on v5e/v6e).
    vmem_cap = _vmem_capacity_bytes()
    usable = max(vmem_cap - (16 << 20), 32 << 20)

    if row_tile is None:
        row_tile = 1024 if vmem_cap >= (96 << 20) else 512

    # Keep at least 2 row tiles so the "parallel" row axis can feed both v7x
    # TensorCores; on single-TC chips this only adds a handful of grid steps.
    TM = max(8, min(row_tile, _round_up(pl.cdiv(N, 2), 8)))
    Np = _round_up(N, TM)
    n_row_tiles = Np // TM

    xf = x.reshape(N, D).astype(jnp.float32)
    if Np != N:
        xf = jnp.pad(xf, ((0, Np - N), (0, 0)))

    weight_bytes = params["w1"].nbytes + params["w2"].nbytes        # bf16 stacks
    small_bytes = (params["ln_g"].nbytes + params["ln_b"].nbytes
                   + params["b1"].nbytes + params["b2"].nbytes
                   + params["fg"].nbytes + params["fb"].nbytes)

    # Hold the full weight stack in VMEM when (with 2x buffering margin) it
    # stays well under the per-generation budget; otherwise stream per layer.
    weights_resident = 2 * weight_bytes <= usable // 3

    if weights_resident:
        w1_spec = pl.BlockSpec((n_layers, D, H), lambda i, l: (0, 0, 0))
        w2_spec = pl.BlockSpec((n_layers, H, D), lambda i, l: (0, 0, 0))
        wbuf_bytes = 2 * weight_bytes
    else:
        w1_spec = pl.BlockSpec((pl.Squeezed(), D, H), lambda i, l: (l, 0, 0))
        w2_spec = pl.BlockSpec((pl.Squeezed(), H, D), lambda i, l: (l, 0, 0))
        wbuf_bytes = 2 * 2 * D * H * 2        # two weights, double-buffered, bf16

    vmem_budget = int(
        2 * 2 * TM * D * 4                     # x + out blocks, double-buffered, f32
        + wbuf_bytes                           # weight buffers
        + 2 * small_bytes                      # resident per-layer params (+margin)
        + 2 * TM * H * 4                       # (TM, H) f32 GELU intermediate (+margin)
        + 2 * TM * D * 4                       # (TM, D) f32 temporaries
        + (8 << 20))                           # slack for compiler temporaries
    vmem_limit = min(max(vmem_budget, 32 << 20), usable)

    cost = pl.CostEstimate(
        flops=4 * Np * D * H * n_layers + 10 * Np * D * (n_layers + 1),
        transcendentals=Np * H * n_layers,
        bytes_accessed=(2 * Np * D * 4
                        + (weight_bytes if weights_resident
                           else weight_bytes * n_row_tiles)
                        + small_bytes),
    )

    kernel = functools.partial(memory_kernel, weights_resident=weights_resident)

    out = pl.pallas_call(
        kernel,
        out_shape=jax.ShapeDtypeStruct((Np, D), jnp.float32),
        grid_spec=pltpu.PrefetchScalarGridSpec(
            num_scalar_prefetch=0,
            grid=(n_row_tiles, n_layers),      # layer axis innermost (accumulator)
            in_specs=[
                pl.BlockSpec((TM, D), lambda i, l: (i, 0)),               # x (seed @ l==0)
                pl.BlockSpec((n_layers, 1, D), lambda i, l: (0, 0, 0)),   # ln gamma (resident)
                pl.BlockSpec((n_layers, 1, D), lambda i, l: (0, 0, 0)),   # ln beta  (resident)
                w1_spec,                                                  # W1 (bf16)
                pl.BlockSpec((n_layers, 1, H), lambda i, l: (0, 0, 0)),   # b1 (resident)
                w2_spec,                                                  # W2 (bf16)
                pl.BlockSpec((n_layers, 1, D), lambda i, l: (0, 0, 0)),   # b2 (resident)
                pl.BlockSpec((1, D), lambda i, l: (0, 0)),                # final gamma
                pl.BlockSpec((1, D), lambda i, l: (0, 0)),                # final beta
            ],
            out_specs=pl.BlockSpec((TM, D), lambda i, l: (i, 0)),         # resident accumulator
        ),
        compiler_params=pltpu.CompilerParams(
            dimension_semantics=("parallel", "arbitrary"),
            vmem_limit_bytes=vmem_limit,
        ),
        cost_estimate=cost,
    )(xf, params["ln_g"], params["ln_b"], params["w1"], params["b1"],
      params["w2"], params["b2"], params["fg"], params["fb"])

    return out[:N].reshape(B, S, D)


def init_params(key, embed_dim, n_layers=8, expansion_factor=4):
    """Torch-like init (LN ones/zeros, Linear U(-1/sqrt(fan_in), ..)); W1/W2 stored bf16."""
    D, H = embed_dim, embed_dim * expansion_factor
    k = jax.random.split(key, 4 * n_layers)
    bd1, bd2 = 1.0 / math.sqrt(D), 1.0 / math.sqrt(H)
    w1 = jnp.stack([jax.random.uniform(k[4 * i + 0], (D, H), jnp.float32, -bd1, bd1)
                    for i in range(n_layers)])
    b1 = jnp.stack([jax.random.uniform(k[4 * i + 1], (1, H), jnp.float32, -bd1, bd1)
                    for i in range(n_layers)])
    w2 = jnp.stack([jax.random.uniform(k[4 * i + 2], (H, D), jnp.float32, -bd2, bd2)
                    for i in range(n_layers)])
    b2 = jnp.stack([jax.random.uniform(k[4 * i + 3], (1, D), jnp.float32, -bd2, bd2)
                    for i in range(n_layers)])
    return dict(
        ln_g=jnp.ones((n_layers, 1, D), jnp.float32),
        ln_b=jnp.zeros((n_layers, 1, D), jnp.float32),
        w1=w1.astype(jnp.bfloat16), b1=b1,
        w2=w2.astype(jnp.bfloat16), b2=b2,
        fg=jnp.ones((1, D), jnp.float32),
        fb=jnp.zeros((1, D), jnp.float32),
    )


def reference_forward(x, params):
    """Pure-JAX reference mirroring the kernel's precision (bf16 matmuls, f32 accum)."""
    B, S, D = x.shape
    out = x.reshape(B * S, D).astype(jnp.float32)
    n_layers = params["w1"].shape[0]
    for l in range(n_layers):
        h = _layernorm(out, params["ln_g"][l, 0], params["ln_b"][l, 0])
        a = jnp.dot(h.astype(jnp.bfloat16), params["w1"][l],
                    preferred_element_type=jnp.float32) + params["b1"][l, 0]
        a = 0.5 * a * (1.0 + jax.lax.erf(a * jnp.float32(_INV_SQRT2)))
        y = jnp.dot(a.astype(jnp.bfloat16), params["w2"][l],
                    preferred_element_type=jnp.float32) + params["b2"][l, 0]
        out = out + y
    out = _layernorm(out, params["fg"][0], params["fb"][0])
    return out.reshape(B, S, D)


def reference_forward_f32(x, params):
    """Full-f32 reference of the PyTorch forward (eval mode) for a loose sanity check."""
    B, S, D = x.shape
    out = x.reshape(B * S, D).astype(jnp.float32)
    n_layers = params["w1"].shape[0]
    for l in range(n_layers):
        h = _layernorm(out, params["ln_g"][l, 0], params["ln_b"][l, 0])
        a = h @ params["w1"][l].astype(jnp.float32) + params["b1"][l, 0]
        a = 0.5 * a * (1.0 + jax.lax.erf(a * jnp.float32(_INV_SQRT2)))
        y = a @ params["w2"][l].astype(jnp.float32) + params["b2"][l, 0]
        out = out + y
    out = _layernorm(out, params["fg"][0], params["fb"][0])
    return out.reshape(B, S, D)


if __name__ == "__main__":
    # batch=2, seq=8, embed_dim=128 -> hidden=512 (lane-dense last dims).
    B, S, D = 2, 8, 128
    key = jax.random.PRNGKey(0)
    kx, kp = jax.random.split(key)
    x = jax.random.normal(kx, (B, S, D), dtype=jnp.float32)
    params = init_params(kp, D, n_layers=8, expansion_factor=4)

    out = jax.block_until_ready(memory_module_forward(x, params))

    ref_bf16 = reference_forward(x, params)          # same precision as kernel
    ref_f32 = reference_forward_f32(x, params)       # exact torch-f32 semantics

    assert out.shape == (B, S, D)
    assert jnp.allclose(out, ref_bf16, atol=2e-3, rtol=2e-3), \
        "mismatch vs precision-mirrored JAX reference"
    assert jnp.allclose(out, ref_f32, atol=1e-1, rtol=1e-1), \
        "mismatch vs f32 JAX reference (bf16 drift too large)"
    print("KERNEL_OK")
</pallas_src>

<mosaic_0001>
module attributes {stable_mosaic.version = 11 : i64} {
  func.func @memory_kernel(%arg0: i32, %arg1: i32, %arg2: memref<8x128xf32, #tpu.memory_space<vmem>>, %arg3: memref<8x1x128xf32, #tpu.memory_space<vmem>>, %arg4: memref<8x1x128xf32, #tpu.memory_space<vmem>>, %arg5: memref<8x128x512xbf16, #tpu.memory_space<vmem>>, %arg6: memref<8x1x512xf32, #tpu.memory_space<vmem>>, %arg7: memref<8x512x128xbf16, #tpu.memory_space<vmem>>, %arg8: memref<8x1x128xf32, #tpu.memory_space<vmem>>, %arg9: memref<1x128xf32, #tpu.memory_space<vmem>>, %arg10: memref<1x128xf32, #tpu.memory_space<vmem>>, %arg11: memref<8x128xf32, #tpu.memory_space<vmem>>) attributes {dimension_semantics = [#tpu.dimension_semantics<parallel>, #tpu.dimension_semantics<arbitrary>], iteration_bounds = array<i64: 2, 8>, scalar_prefetch = 0 : i64, scratch_operands = 0 : i64, tpu.core_type = #tpu.core_type<tc>, window_params = [{transform_indices = @transform_0, window_bounds = array<i64: 8, 128>}, {pipeline_mode = #tpu.pipeline_mode<synchronous>, transform_indices = @transform_1, window_bounds = array<i64: 8, 1, 128>}, {pipeline_mode = #tpu.pipeline_mode<synchronous>, transform_indices = @transform_2, window_bounds = array<i64: 8, 1, 128>}, {pipeline_mode = #tpu.pipeline_mode<synchronous>, transform_indices = @transform_3, window_bounds = array<i64: 8, 128, 512>}, {pipeline_mode = #tpu.pipeline_mode<synchronous>, transform_indices = @transform_4, window_bounds = array<i64: 8, 1, 512>}, {pipeline_mode = #tpu.pipeline_mode<synchronous>, transform_indices = @transform_5, window_bounds = array<i64: 8, 512, 128>}, {pipeline_mode = #tpu.pipeline_mode<synchronous>, transform_indices = @transform_6, window_bounds = array<i64: 8, 1, 128>}, {pipeline_mode = #tpu.pipeline_mode<synchronous>, transform_indices = @transform_7, window_bounds = array<i64: 1, 128>}, {pipeline_mode = #tpu.pipeline_mode<synchronous>, transform_indices = @transform_8, window_bounds = array<i64: 1, 128>}, {transform_indices = @transform_9, window_bounds = array<i64: 8, 128>}]} {
    %c0_i32 = arith.constant 0 : i32
    %0 = arith.cmpi eq, %arg1, %c0_i32 : i32
    %1 = arith.extui %0 : i1 to i32
    %c0_i32_0 = arith.constant 0 : i32
    %2 = arith.cmpi ne, %1, %c0_i32_0 : i32
    scf.if %2 {
      %c0_27 = arith.constant 0 : index
      %c0_28 = arith.constant 0 : index
      %67 = vector.load %arg2[%c0_27, %c0_28] : memref<8x128xf32, #tpu.memory_space<vmem>>, vector<8x128xf32>
      %c0_29 = arith.constant 0 : index
      %c0_30 = arith.constant 0 : index
      %68 = vector.load %arg11[%c0_29, %c0_30] : memref<8x128xf32, #tpu.memory_space<vmem>>, vector<8x128xf32>
      tpu.vector_store %arg11[%c0_29, %c0_30], %67 {strides = array<i32>} : memref<8x128xf32, #tpu.memory_space<vmem>>, vector<8x128xf32>,
    } else {
    }
    %c0 = arith.constant 0 : index
    %c0_1 = arith.constant 0 : index
    %3 = vector.load %arg11[%c0, %c0_1] : memref<8x128xf32, #tpu.memory_space<vmem>>, vector<8x128xf32>
    %4 = arith.index_cast %arg1 : i32 to index
    %c0_2 = arith.constant 0 : index
    %c0_3 = arith.constant 0 : index
    %5 = vector.load %arg3[%4, %c0_2, %c0_3] : memref<8x1x128xf32, #tpu.memory_space<vmem>>, vector<1x1x128xf32>
    %6 = vector.shape_cast %5 : vector<1x1x128xf32> to vector<1x128xf32>
    %7 = arith.index_cast %arg1 : i32 to index
    %c0_4 = arith.constant 0 : index
    %c0_5 = arith.constant 0 : index
    %8 = vector.load %arg4[%7, %c0_4, %c0_5] : memref<8x1x128xf32, #tpu.memory_space<vmem>>, vector<1x1x128xf32>
    %9 = vector.shape_cast %8 : vector<1x1x128xf32> to vector<1x128xf32>
    %cst = arith.constant dense<0.000000e+00> : vector<8xf32>
    %10 = vector.multi_reduction <add>, %3, %cst [1] : vector<8x128xf32> to vector<8xf32>
    %11 = vector.shape_cast %10 : vector<8xf32> to vector<8x1xf32>
    %cst_6 = arith.constant 1.280000e+02 : f32
    %12 = vector.broadcast %cst_6 : f32 to vector<8x1xf32>
    %13 = arith.divf %11, %12 : vector<8x1xf32>
    %14 = arith.mulf %3, %3 : vector<8x128xf32>
    %cst_7 = arith.constant dense<0.000000e+00> : vector<8xf32>
    %15 = vector.multi_reduction <add>, %14, %cst_7 [1] : vector<8x128xf32> to vector<8xf32>
    %16 = vector.shape_cast %15 : vector<8xf32> to vector<8x1xf32>
    %cst_8 = arith.constant 1.280000e+02 : f32
    %17 = vector.broadcast %cst_8 : f32 to vector<8x1xf32>
    %18 = arith.divf %16, %17 : vector<8x1xf32>
    %19 = arith.mulf %13, %13 : vector<8x1xf32>
    %20 = arith.subf %18, %19 : vector<8x1xf32>
    %cst_9 = arith.constant 0.000000e+00 : f32
    %21 = vector.broadcast %cst_9 : f32 to vector<8x1xf32>
    %22 = arith.maximumf %20, %21 : vector<8x1xf32>
    %23 = vector.broadcast %13 : vector<8x1xf32> to vector<8x128xf32>
    %24 = arith.subf %3, %23 : vector<8x128xf32>
    %cst_10 = arith.constant 9.99999974E-6 : f32
    %25 = vector.broadcast %cst_10 : f32 to vector<8x1xf32>
    %26 = arith.addf %22, %25 : vector<8x1xf32>
    %27 = math.rsqrt %26 : vector<8x1xf32>
    %28 = vector.broadcast %27 : vector<8x1xf32> to vector<8x128xf32>
    %29 = arith.mulf %24, %28 : vector<8x128xf32>
    %30 = vector.broadcast %6 : vector<1x128xf32> to vector<8x128xf32>
    %31 = arith.mulf %29, %30 : vector<8x128xf32>
    %32 = vector.broadcast %9 : vector<1x128xf32> to vector<8x128xf32>
    %33 = arith.addf %31, %32 : vector<8x128xf32>
    %34 = arith.index_cast %arg1 : i32 to index
    %c0_11 = arith.constant 0 : index
    %c0_12 = arith.constant 0 : index
    %35 = vector.load %arg5[%34, %c0_11, %c0_12] : memref<8x128x512xbf16, #tpu.memory_space<vmem>>, vector<1x128x512xbf16>
    %36 = vector.shape_cast %35 : vector<1x128x512xbf16> to vector<128x512xbf16>
    %37 = arith.index_cast %arg1 : i32 to index
    %c0_13 = arith.constant 0 : index
    %c0_14 = arith.constant 0 : index
    %38 = vector.load %arg7[%37, %c0_13, %c0_14] : memref<8x512x128xbf16, #tpu.memory_space<vmem>>, vector<1x512x128xbf16>
    %39 = vector.shape_cast %38 : vector<1x512x128xbf16> to vector<512x128xbf16>
    %40 = arith.truncf %33 : vector<8x128xf32> to vector<8x128xbf16>
    %cst_15 = arith.constant dense<0.000000e+00> : vector<8x512xf32>
    %41 = tpu.matmul %40, %36, %cst_15 {dimension_numbers = #tpu.dot_dimension_numbers<[1], [0], [0], [1], [0, 0, 1, 1], [], []>} : vector<8x128xbf16>, vector<128x512xbf16>, vector<8x512xf32> -> vector<8x512xf32>
    %42 = arith.index_cast %arg1 : i32 to index
    %c0_16 = arith.constant 0 : index
    %c0_17 = arith.constant 0 : index
    %43 = vector.load %arg6[%42, %c0_16, %c0_17] : memref<8x1x512xf32, #tpu.memory_space<vmem>>, vector<1x1x512xf32>
    %44 = vector.shape_cast %43 : vector<1x1x512xf32> to vector<1x512xf32>
    %45 = vector.broadcast %44 : vector<1x512xf32> to vector<8x512xf32>
    %46 = arith.addf %41, %45 : vector<8x512xf32>
    %cst_18 = arith.constant 5.000000e-01 : f32
    %47 = vector.broadcast %cst_18 : f32 to vector<8x512xf32>
    %48 = arith.mulf %47, %46 : vector<8x512xf32>
    %cst_19 = arith.constant 0.707106769 : f32
    %49 = vector.broadcast %cst_19 : f32 to vector<8x512xf32>
    %50 = arith.mulf %46, %49 : vector<8x512xf32>
    %51 = math.erf %50 : vector<8x512xf32>
    %cst_20 = arith.constant 1.000000e+00 : f32
    %52 = vector.broadcast %cst_20 : f32 to vector<8x512xf32>
    %53 = arith.addf %52, %51 : vector<8x512xf32>
    %54 = arith.mulf %48, %53 : vector<8x512xf32>
    %55 = arith.truncf %54 : vector<8x512xf32> to vector<8x512xbf16>
    %cst_21 = arith.constant dense<0.000000e+00> : vector<8x128xf32>
    %56 = tpu.matmul %55, %39, %cst_21 {dimension_numbers = #tpu.dot_dimension_numbers<[1], [0], [0], [1], [0, 0, 1, 1], [], []>} : vector<8x512xbf16>, vector<512x128xbf16>, vector<8x128xf32> -> vector<8x128xf32>
    %57 = arith.index_cast %arg1 : i32 to index
    %c0_22 = arith.constant 0 : index
    %c0_23 = arith.constant 0 : index
    %58 = vector.load %arg8[%57, %c0_22, %c0_23] : memref<8x1x128xf32, #tpu.memory_space<vmem>>, vector<1x1x128xf32>
    %59 = vector.shape_cast %58 : vector<1x1x128xf32> to vector<1x128xf32>
    %60 = vector.broadcast %59 : vector<1x128xf32> to vector<8x128xf32>
    %61 = arith.addf %56, %60 : vector<8x128xf32>
    %62 = arith.addf %3, %61 : vector<8x128xf32>
    %c0_24 = arith.constant 0 : index
    %c0_25 = arith.constant 0 : index
    %63 = vector.load %arg11[%c0_24, %c0_25] : memref<8x128xf32, #tpu.memory_space<vmem>>, vector<8x128xf32>
    tpu.vector_store %arg11[%c0_24, %c0_25], %62 {strides = array<i32>} : memref<8x128xf32, #tpu.memory_space<vmem>>, vector<8x128xf32>,
    %c7_i32 = arith.constant 7 : i32
    %64 = arith.cmpi eq, %arg1, %c7_i32 : i32
    %65 = arith.extui %64 : i1 to i32
    %c0_i32_26 = arith.constant 0 : i32
    %66 = arith.cmpi ne, %65, %c0_i32_26 : i32
    scf.if %66 {
      %c0_27 = arith.constant 0 : index
      %c0_28 = arith.constant 0 : index
      %67 = vector.load %arg11[%c0_27, %c0_28] : memref<8x128xf32, #tpu.memory_space<vmem>>, vector<8x128xf32>
      %c0_29 = arith.constant 0 : index
      %c0_30 = arith.constant 0 : index
      %68 = vector.load %arg9[%c0_29, %c0_30] : memref<1x128xf32, #tpu.memory_space<vmem>>, vector<1x128xf32>
      %c0_31 = arith.constant 0 : index
      %c0_32 = arith.constant 0 : index
      %69 = vector.load %arg10[%c0_31, %c0_32] : memref<1x128xf32, #tpu.memory_space<vmem>>, vector<1x128xf32>
      %cst_33 = arith.constant dense<0.000000e+00> : vector<8xf32>
      %70 = vector.multi_reduction <add>, %67, %cst_33 [1] : vector<8x128xf32> to vector<8xf32>
      %71 = vector.shape_cast %70 : vector<8xf32> to vector<8x1xf32>
      %cst_34 = arith.constant 1.280000e+02 : f32
      %72 = vector.broadcast %cst_34 : f32 to vector<8x1xf32>
      %73 = arith.divf %71, %72 : vector<8x1xf32>
      %74 = arith.mulf %67, %67 : vector<8x128xf32>
      %cst_35 = arith.constant dense<0.000000e+00> : vector<8xf32>
      %75 = vector.multi_reduction <add>, %74, %cst_35 [1] : vector<8x128xf32> to vector<8xf32>
      %76 = vector.shape_cast %75 : vector<8xf32> to vector<8x1xf32>
      %cst_36 = arith.constant 1.280000e+02 : f32
      %77 = vector.broadcast %cst_36 : f32 to vector<8x1xf32>
      %78 = arith.divf %76, %77 : vector<8x1xf32>
      %79 = arith.mulf %73, %73 : vector<8x1xf32>
      %80 = arith.subf %78, %79 : vector<8x1xf32>
      %cst_37 = arith.constant 0.000000e+00 : f32
      %81 = vector.broadcast %cst_37 : f32 to vector<8x1xf32>
      %82 = arith.maximumf %80, %81 : vector<8x1xf32>
      %83 = vector.broadcast %73 : vector<8x1xf32> to vector<8x128xf32>
      %84 = arith.subf %67, %83 : vector<8x128xf32>
      %cst_38 = arith.constant 9.99999974E-6 : f32
      %85 = vector.broadcast %cst_38 : f32 to vector<8x1xf32>
      %86 = arith.addf %82, %85 : vector<8x1xf32>
      %87 = math.rsqrt %86 : vector<8x1xf32>
      %88 = vector.broadcast %87 : vector<8x1xf32> to vector<8x128xf32>
      %89 = arith.mulf %84, %88 : vector<8x128xf32>
      %90 = vector.broadcast %68 : vector<1x128xf32> to vector<8x128xf32>
      %91 = arith.mulf %89, %90 : vector<8x128xf32>
      %92 = vector.broadcast %69 : vector<1x128xf32> to vector<8x128xf32>
      %93 = arith.addf %91, %92 : vector<8x128xf32>
      %c0_39 = arith.constant 0 : index
      %c0_40 = arith.constant 0 : index
      %94 = vector.load %arg11[%c0_39, %c0_40] : memref<8x128xf32, #tpu.memory_space<vmem>>, vector<8x128xf32>
      tpu.vector_store %arg11[%c0_39, %c0_40], %93 {strides = array<i32>} : memref<8x128xf32, #tpu.memory_space<vmem>>, vector<8x128xf32>,
    } else {
    }
    return
  }
  func.func @transform_0(%arg0: i32, %arg1: i32) -> (i32, i32) {
    %c0_i32 = arith.constant 0 : i32
    %c0_i32_0 = arith.constant 0 : i32
    return %arg0, %c0_i32 : i32, i32
  }
  func.func @transform_1(%arg0: i32, %arg1: i32) -> (i32, i32, i32) {
    %c0_i32 = arith.constant 0 : i32
    %c0_i32_0 = arith.constant 0 : i32
    %c0_i32_1 = arith.constant 0 : i32
    %c0_i32_2 = arith.constant 0 : i32
    return %c0_i32, %c0_i32_0, %c0_i32_1 : i32, i32, i32
  }
  func.func @transform_2(%arg0: i32, %arg1: i32) -> (i32, i32, i32) {
    %c0_i32 = arith.constant 0 : i32
    %c0_i32_0 = arith.constant 0 : i32
    %c0_i32_1 = arith.constant 0 : i32
    %c0_i32_2 = arith.constant 0 : i32
    return %c0_i32, %c0_i32_0, %c0_i32_1 : i32, i32, i32
  }
  func.func @transform_3(%arg0: i32, %arg1: i32) -> (i32, i32, i32) {
    %c0_i32 = arith.constant 0 : i32
    %c0_i32_0 = arith.constant 0 : i32
    %c0_i32_1 = arith.constant 0 : i32
    %c0_i32_2 = arith.constant 0 : i32
    return %c0_i32, %c0_i32_0, %c0_i32_1 : i32, i32, i32
  }
  func.func @transform_4(%arg0: i32, %arg1: i32) -> (i32, i32, i32) {
    %c0_i32 = arith.constant 0 : i32
    %c0_i32_0 = arith.constant 0 : i32
    %c0_i32_1 = arith.constant 0 : i32
    %c0_i32_2 = arith.constant 0 : i32
    return %c0_i32, %c0_i32_0, %c0_i32_1 : i32, i32, i32
  }
  func.func @transform_5(%arg0: i32, %arg1: i32) -> (i32, i32, i32) {
    %c0_i32 = arith.constant 0 : i32
    %c0_i32_0 = arith.constant 0 : i32
    %c0_i32_1 = arith.constant 0 : i32
    %c0_i32_2 = arith.constant 0 : i32
    return %c0_i32, %c0_i32_0, %c0_i32_1 : i32, i32, i32
  }
  func.func @transform_6(%arg0: i32, %arg1: i32) -> (i32, i32, i32) {
    %c0_i32 = arith.constant 0 : i32
    %c0_i32_0 = arith.constant 0 : i32
    %c0_i32_1 = arith.constant 0 : i32
    %c0_i32_2 = arith.constant 0 : i32
    return %c0_i32, %c0_i32_0, %c0_i32_1 : i32, i32, i32
  }
  func.func @transform_7(%arg0: i32, %arg1: i32) -> (i32, i32) {
    %c0_i32 = arith.constant 0 : i32
    %c0_i32_0 = arith.constant 0 : i32
    %c0_i32_1 = arith.constant 0 : i32
    return %c0_i32, %c0_i32_0 : i32, i32
  }
  func.func @transform_8(%arg0: i32, %arg1: i32) -> (i32, i32) {
    %c0_i32 = arith.constant 0 : i32
    %c0_i32_0 = arith.constant 0 : i32
    %c0_i32_1 = arith.constant 0 : i32
    return %c0_i32, %c0_i32_0 : i32, i32
  }
  func.func @transform_9(%arg0: i32, %arg1: i32) -> (i32, i32) {
    %c0_i32 = arith.constant 0 : i32
    %c0_i32_0 = arith.constant 0 : i32
    return %arg0, %c0_i32 : i32, i32
  }
}

</mosaic_0001>

<bundles_post_ra>
// kernel: tpu_custom_call.1
= control target key start
LH: loop header
LB: loop body
LE: loop exit
PB: predicated region body
PF: predicated region fallthrough
CT: control target
= control target key end

     0   :  { %s2477_s0 = inlined_call_operand.hbm [shape: f32[16,128], index: 0, kind: input, shape index: {}]   ;;  %s2478_s1 = inlined_call_operand.hbm [shape: f32[8,1,128], index: 1, kind: input, shape index: {}]   ;;  %s2479_s2 = inlined_call_operand.hbm [shape: f32[8,1,128], index: 2, kind: input, shape index: {}]   ;;  %s2480_s3 = inlined_call_operand.hbm [shape: bf16[8,128,512], index: 3, kind: input, shape index: {}]   ;;  %s2481_s4 = inlined_call_operand.hbm [shape: f32[8,1,512], index: 4, kind: input, shape index: {}]   ;;  %s2482_s5 = inlined_call_operand.hbm [shape: bf16[8,512,128], index: 5, kind: input, shape index: {}]   ;;  %s2483_s6 = inlined_call_operand.vmem [shape: f32[8,1,128], index: 6, kind: input, shape index: {}]   ;;  %s2484_s7 = inlined_call_operand.vmem [shape: f32[1,128], index: 7, kind: input, shape index: {}]   ;;  %s2485_s8 = inlined_call_operand.vmem [shape: f32[1,128], index: 8, kind: input, shape index: {}]   ;;  %s2486_s9 = inlined_call_operand.hbm [shape: f32[16,128], index: 9, kind: output, shape index: {}]  }
   0x1   :  { %2494 = sst [smem:[#allocation20_spill]] %s2478_s1 }
   0x2   :  { %2495 = sst [smem:[#allocation21_spill]] %s2479_s2 }
   0x3   :  { %2496 = sst [smem:[#allocation22_spill]] %s2483_s6 }
   0x4   :  { %2497 = sst [smem:[#allocation23_spill]] %s2484_s7 }
   0x5   :  { %2498 = sst [smem:[#allocation24_spill]] %s2485_s8 }
   0x6   :  { %2499 = sst [smem:[#allocation25_spill]] %s2486_s9 }
   0x7   :  { %14 = vsyncpa [#allocation3], 0 }
   0x8   :  { %16 = vsyncpa [#allocation3 + $0x1], 0 }
   0x9   :  { %17 = vsyncpa [#allocation6], 0 }
   0xa   :  { %18 = vsyncpa [#allocation9], 0 }
   0xb   :  { %19 = vsyncpa [#allocation12], 0 }
   0xc   :  { %20 = vsyncpa [#allocation4], 0 }
   0xd   :  { %22 = vsyncpa [#allocation4 + $0x1], 0  ;;  %s2052_s30 = smov 0   ;;  %s2054_s10 = smov 0  }
   0xe   :  { %s2056_s11 = smov 0   ;;  %s2058_s12 = smov 0  }
   0xf   :  { %s2060_s13 = smov 0   ;;  %s2062_s14 = smov 0  }
  0x10   :  { %s2064_s15 = smov 0   ;;  %s2066_s16 = smov 0  }
  0x11 LB: > { %2500 = sst [smem:[#allocation19_spill]] %s1975_s13  ;;  %s2487_s17 = sadd.s32 4294967295, %s1987_s16   ;;  %s1987_s16 = sphi %s2066_s16, %s28_s16   ;;  %s1983_s15 = sphi %s2064_s15, %s2530_s15   ;;  %s1979_s14 = sphi %s2062_s14, %s2529_s14   ;;  %s1975_s13 = sphi %s2060_s13, %s2528_s13   ;;  %s1971_s12 = sphi %s2058_s12, %s2527_s12   ;;  %s1967_s11 = sphi %s2056_s11, %s2526_s11   ;;  %s1963_s10 = sphi %s2054_s10, %s2525_s10   ;;  %s1959_s30 = sphi %s2052_s30, %s2524_s30  }
  0x12   : > { %p1338_p0 = scmp.ge.s32.totalorder %s1987_s16, 1  ;;  %p2096_p1 = scmp.eq.s32.totalorder %s2487_s17, 0 }
  0x13   : > { %p265_p2 = scmp.lt.s32.totalorder %s1987_s16, 17  ;;  %s1989_s20 = smov [#allocation5]  }
  0x14   : > { %s2501_s18 = scalar_select %p2096_p1, 1, 0 }
  0x15   : > { %p2101_p3 = pnand %p1338_p0, %p265_p2  ;;  %s277_s21 = sshll.u32 %s1989_s20, 4  ;;  %s278_s21 = int_to_ptr.vmem [resolvable:$true] %s277_s21 }
  0x16   : > { %s1990_s23 = smov [#allocation8]   ;;  %s2504_s1 = sld [smem:[#allocation20_spill]] }
  0x17   : > { %s2502_s19 = scalar_select %p2101_p3, 1, 0 }
  0x18   : > { %p1504_p4 = pneg %p2101_p3  ;;  %s303_s24 = sshll.u32 %s1990_s23, 4  ;;  %s2113_s24 = int_to_ptr.vmem [resolvable:$true] %s303_s24 }
  0x1a   : > { %p2109_p5 = pnand %p1504_p4, %p2096_p1 }
  0x1c   : > { %s1707_s27 = scalar_lea.hbm %s2504_s1, 128  ;;  %p2123_p7 = pneg %p2109_p5 }
  0x1d   : > { %p1708_p6 = scmp.ne.s32.totalorder %s2504_s1, %s1707_s27  ;;  %p1714_p10 = scmp.lt.u32.totalorder %s1707_s27, %s2504_s1 }
  0x1f   : > { %p1710_p8 = pnand %p2123_p7, %p1708_p6 }
  0x21   : > { %p1711_p9 = pneg %p1710_p8 }
  0x23   : > { %p1716_p11 = pnand %p1714_p10, %p1711_p9 }
  0x25   : > { %1719 = shalt.err (!%p1716_p11)
}
  0x26   : > { %s1720_s25 = scalar_lea.vmem %s278_s21, 128  ;;  %p1728_p2 = scmp.lt.s32.totalorder %s278_s21, %s278_s21 }
  0x27   : > { %p1721_p12 = scmp.ne.s32.totalorder %s278_s21, %s1720_s25  ;;  %p1729_p4 = scmp.lt.s32.totalorder %s1720_s25, %s1720_s25 }
  0x29   : > { %p1723_p13 = pnand %p1721_p12, %p2123_p7  ;;  %p1730_p3 = por %p1729_p4, %p1728_p2 }
  0x2b   : > { %p1724_p0 = pneg %p1723_p13 }
  0x2d   : > { %p1731_p1 = pnand %p1730_p3, %p1724_p0 }
  0x2f   : > { %1734 = shalt.err (!%p1731_p1)
}
  0x30   : > { %s1991_s26 = smov 16   ;;  %s2492_s28 = smov 1  }
  0x31   : > { %1507 = dma.hbm_to_vmem [thread:$0]  (!%p2109_p5), %s2504_s1, 128, %s278_s21, [#allocation6], %s1991_s26, %s1991_s26, %s2492_s28  }
  0x32   : > { %s1735_s9 = scalar_lea.hbm %s2480_s3, 32768 }
  0x33   : > { %p1736_p1 = scmp.ne.s32.totalorder %s2480_s3, %s1735_s9  ;;  %p1742_p8 = scmp.lt.u32.totalorder %s1735_s9, %s2480_s3 }
  0x35   : > { %p1738_p3 = pnand %p1736_p1, %p2123_p7 }
  0x37   : > { %p1739_p6 = pneg %p1738_p3 }
  0x39   : > { %p1744_p9 = pnand %p1742_p8, %p1739_p6 }
  0x3b   : > { %1747 = shalt.err (!%p1744_p9)
}
  0x3c   : > { %s1748_s21 = scalar_lea.vmem %s2113_s24, 32768  ;;  %p1756_p13 = scmp.lt.s32.totalorder %s2113_s24, %s2113_s24 }
  0x3d   : > { %p1749_p10 = scmp.ne.s32.totalorder %s2113_s24, %s1748_s21  ;;  %p1757_p0 = scmp.lt.s32.totalorder %s1748_s21, %s1748_s21 }
  0x3f   : > { %p1751_p11 = pnand %p1749_p10, %p2123_p7  ;;  %p1758_p2 = por %p1757_p0, %p1756_p13 }
  0x41   : > { %p1752_p12 = pneg %p1751_p11 }
  0x43   : > { %p1759_p4 = pnand %p1758_p2, %p1752_p12 }
  0x45   : > { %1762 = shalt.err (!%p1759_p4)
}
  0x46   : > { %s1993_s13 = smov 256   ;;  %s1994_s9 = smov [#allocation7]  }
  0x47   : > { %1513 = dma.hbm_to_vmem [thread:$0]  (!%p2109_p5), %s2480_s3, 32768, %s2113_s24, [#allocation9], %s1993_s13, %s1993_s13, %s1991_s26  }
  0x48   : > { %s290_s17 = sshll.u32 %s1994_s9, 4  ;;  %s1995_s27 = smov [#allocation10]   ;;  %s291_s17 = int_to_ptr.vmem [resolvable:$true] %s290_s17 }
  0x49   : > { %s316_s29 = sshll.u32 %s1995_s27, 4  ;;  %s2506_s2 = sld [smem:[#allocation21_spill]]  ;;  %s317_s29 = int_to_ptr.vmem [resolvable:$true] %s316_s29 }
  0x4f   : > { %s1763_s21 = scalar_lea.hbm %s2506_s2, 128 }
  0x50   : > { %p1764_p1 = scmp.ne.s32.totalorder %s2506_s2, %s1763_s21  ;;  %p1770_p8 = scmp.lt.u32.totalorder %s1763_s21, %s2506_s2 }
  0x52   : > { %p1766_p3 = pnand %p1764_p1, %p2123_p7 }
  0x54   : > { %p1767_p6 = pneg %p1766_p3 }
  0x56   : > { %p1772_p9 = pnand %p1770_p8, %p1767_p6 }
  0x58   : > { %1775 = shalt.err (!%p1772_p9)
}
  0x59   : > { %s1776_s24 = scalar_lea.vmem %s291_s17, 128  ;;  %p1784_p13 = scmp.lt.s32.totalorder %s291_s17, %s291_s17 }
  0x5a   : > { %p1777_p10 = scmp.ne.s32.totalorder %s291_s17, %s1776_s24  ;;  %p1785_p0 = scmp.lt.s32.totalorder %s1776_s24, %s1776_s24 }
  0x5c   : > { %p1779_p11 = pnand %p1777_p10, %p2123_p7  ;;  %p1786_p2 = por %p1785_p0, %p1784_p13 }
  0x5e   : > { %p1780_p12 = pneg %p1779_p11 }
  0x60   : > { %p1787_p4 = pnand %p1786_p2, %p1780_p12 }
  0x62   : > { %1790 = shalt.err (!%p1787_p4)
}
  0x63   : > { %s2507_s1 = smov 1   ;;  %s1791_s9 = scalar_lea.hbm %s2481_s4, 512 }
  0x64   : > { %1510 = dma.hbm_to_vmem [thread:$0]  (!%p2109_p5), %s2506_s2, 128, %s291_s17, [#allocation6], %s1991_s26, %s1991_s26, %s2507_s1  }
  0x65   : > { %p1792_p1 = scmp.ne.s32.totalorder %s2481_s4, %s1791_s9  ;;  %p1798_p8 = scmp.lt.u32.totalorder %s1791_s9, %s2481_s4 }
  0x67   : > { %p1794_p3 = pnand %p1792_p1, %p2123_p7 }
  0x69   : > { %p1795_p6 = pneg %p1794_p3 }
  0x6b   : > { %p1800_p9 = pnand %p1798_p8, %p1795_p6 }
  0x6d   : > { %1803 = shalt.err (!%p1800_p9)
}
  0x6e   : > { %s1804_s7 = scalar_lea.vmem %s317_s29, 512  ;;  %p1812_p13 = scmp.lt.s32.totalorder %s317_s29, %s317_s29 }
  0x6f   : > { %p1805_p10 = scmp.ne.s32.totalorder %s317_s29, %s1804_s7  ;;  %p1813_p0 = scmp.lt.s32.totalorder %s1804_s7, %s1804_s7 }
  0x71   : > { %p1807_p11 = pnand %p1805_p10, %p2123_p7  ;;  %p1814_p2 = por %p1813_p0, %p1812_p13 }
  0x73   : > { %p1808_p12 = pneg %p1807_p11 }
  0x75   : > { %p1815_p4 = pnand %p1814_p2, %p1808_p12 }
  0x77   : > { %1818 = shalt.err (!%p1815_p4)
}
  0x78   : > { %s1996_s26 = smov 64   ;;  %s1997_s17 = smov 4  }
  0x79   : > { %1516 = dma.hbm_to_vmem [thread:$0]  (!%p2109_p5), %s2481_s4, 512, %s317_s29, [#allocation9], %s1996_s26, %s1996_s26, %s1997_s17  }
  0x7a   : > { %s1998_s6 = smov [#allocation11]   ;;  %s1819_s9 = scalar_lea.hbm %s2482_s5, 32768 }
  0x7b   : > { %s329_s28 = sshll.u32 %s1998_s6, 4  ;;  %p1820_p1 = scmp.ne.s32.totalorder %s2482_s5, %s1819_s9  ;;  %s330_s28 = int_to_ptr.vmem [resolvable:$true] %s329_s28 }
  0x7c   : > { %p1826_p8 = scmp.lt.u32.totalorder %s1819_s9, %s2482_s5 }
  0x7d   : > { %p1822_p3 = pnand %p1820_p1, %p2123_p7 }
  0x7f   : > { %p1823_p6 = pneg %p1822_p3 }
  0x81   : > { %p1828_p9 = pnand %p1826_p8, %p1823_p6 }
  0x83   : > { %1831 = shalt.err (!%p1828_p9)
}
  0x84   : > { %s1832_s29 = scalar_lea.vmem %s330_s28, 32768  ;;  %p1840_p13 = scmp.lt.s32.totalorder %s330_s28, %s330_s28 }
  0x85   : > { %p1833_p10 = scmp.ne.s32.totalorder %s330_s28, %s1832_s29  ;;  %p1841_p0 = scmp.lt.s32.totalorder %s1832_s29, %s1832_s29 }
  0x87   : > { %p1835_p11 = pnand %p1833_p10, %p2123_p7  ;;  %p1842_p2 = por %p1841_p0, %p1840_p13 }
  0x89   : > { %p1836_p12 = pneg %p1835_p11 }
  0x8b   : > { %p1843_p4 = pnand %p1842_p2, %p1836_p12 }
  0x8d   : > { %1846 = shalt.err (!%p1843_p4)
}
  0x8e   : > { %1519 = dma.hbm_to_vmem [thread:$0]  (!%p2109_p5), %s2482_s5, 32768, %s330_s28, [#allocation12], %s1996_s26, %s1996_s26, %s1997_s17  }
  0x8f   : > { %s1337_s20 = sadd.s32 4294967294, %s1987_s16   ;;  %s37_s1 = sadd.s32 1, %s1979_s14 }
  0x90   : > { %p38_p7 = scmp.ge.s32.totalorder %s37_s1, 8  ;;  %s40_s22 = sadd.s32 1, %s1983_s15 }
  0x91   : > { %s47_s6 = sadd.s32 1, %s1967_s11  ;;  %p54_p1 = scmp.ne.s32.totalorder %s1967_s11, %s1963_s10 }
  0x92   : > { %s2532_s1 = smov (%p38_p7, %s37_s1), 0  ;;  %s2534_s22 = smov (!%p38_p7, %s40_s22), %s1983_s15 }
  0x93   : > { %p55_p3 = scmp.eq.s32.totalorder %s1987_s16, 0  ;;  %p60_p6 = scmp.ne.s32.totalorder %s1963_s10, %s1959_s30 }
  0x94   : > { %p42_p8 = scmp.ge.s32.totalorder %s2534_s22, 2  ;;  %s2508_s13 = sadd.s32 4294967295, %s1987_s16  }
  0x95   : > { %p252_p9 = scmp.eq.s32.totalorder %s2508_s13, 15  ;;  %p2237_p5 = por %p55_p3, %p54_p1 }
  0x96   : > { %p2510_p10 = scmp.ne.s32.totalorder %s2501_s18, 0  ;;  %s2536_s22 = smov (%p42_p8, %s2534_s22), 0 }
  0x97   : > { %p2249_p12 = por %p252_p9, %p54_p1  ;;  %p258_p13 = scmp.eq.s32.totalorder %s1337_s20, 15 }
  0x98   : > { %p2243_p11 = por %p2510_p10, %p60_p6  ;;  %s44_s8 = ssub.s32 %s1983_s15, %s2536_s22 }
  0x99   : > { %s2512_s28 = scalar_select %p2249_p12, 1, 0 }
  0x9a   : > { %p1533_p0 = scmp.lt.s32.totalorder %s1987_s16, 16  ;;  %p45_p2 = scmp.eq.s32.totalorder %s44_s8, 0 }
  0x9b   : > { %p2256_p4 = por %p258_p13, %p60_p6  ;;  %s352_s27 = sand.u32 1, %s1967_s11  }
  0x9c   : > { %s1346_s23 = sshll.u32 %s1983_s15, 7  ;;  %s1345_s21 = sshll.u32 %s352_s27, 3 }
  0x9d   : > { %s2513_s9 = scalar_select %p2256_p4, 1, 0 }
  0x9e   : > { %s2263_s25 = scalar_select %p45_p2, %s1967_s11, %s47_s6  }
  0x9f   : > { %s2268_s24 = scalar_lea.hbm %s2477_s0, %s1346_s23  ;;  %s356_s20 = scalar_lea.vmem [#allocation2], %s1345_s21 }
  0xa0   : > { %s363_s13 = sshll.u32 %s356_s20, 4  ;;  %p2272_p7 = pnand %p1533_p0, %p2237_p5  ;;  %s2276_s13 = int_to_ptr.vmem [resolvable:$true] %s363_s13 }
  0xa1   : > { %s353_s6 = scalar_lea.sflag [#allocation3], %s352_s27  ;;  %s1847_s2 = scalar_lea.hbm %s2268_s24, 128 }
  0xa2   : > { %p1848_p1 = scmp.ne.s32.totalorder %s2268_s24, %s1847_s2  ;;  %p1849_p3 = pneg %p2272_p7 }
  0xa3   : > { %s1852_s26 = scalar_lea.hbm %s2477_s0, 256  ;;  %p1853_p9 = scmp.lt.u32.totalorder %s2268_s24, %s2477_s0 }
  0xa4   : > { %p1850_p6 = pnand %p1849_p3, %p1848_p1  ;;  %p1854_p5 = scmp.lt.u32.totalorder %s1852_s26, %s1847_s2 }
  0xa5   : > { %p1856_p13 = scmp.lt.u32.totalorder %s1847_s2, %s2268_s24 }
  0xa6   : > { %p1851_p8 = pneg %p1850_p6  ;;  %p1855_p10 = por %p1854_p5, %p1853_p9 }
  0xa8   : > { %p1857_p0 = por %p1856_p13, %p1855_p10 }
  0xaa   : > { %p1858_p2 = pnand %p1857_p0, %p1851_p8 }
  0xac   : > { %1861 = shalt.err (!%p1858_p2)
}
  0xad   : > { %s1862_s27 = scalar_lea.vmem %s2276_s13, 128  ;;  %s1999_s20 = smov [#allocation2]  }
  0xae   : > { %p1863_p1 = scmp.ne.s32.totalorder %s2276_s13, %s1862_s27  ;;  %s1867_s23 = sshll.u32 %s1999_s20, 4  ;;  %s1868_s23 = int_to_ptr.vmem [resolvable:$false] %s1867_s23 }
  0xaf   : > { %s1869_s21 = scalar_lea.vmem %s1868_s23, 256  ;;  %p1870_p12 = scmp.lt.s32.totalorder %s2276_s13, %s1868_s23 }
  0xb0   : > { %p1865_p6 = pnand %p1863_p1, %p1849_p3  ;;  %p1871_p9 = scmp.lt.s32.totalorder %s1869_s21, %s1862_s27 }
  0xb2   : > { %p1866_p4 = pneg %p1865_p6  ;;  %p1872_p5 = por %p1871_p9, %p1870_p12 }
  0xb4   : > { %p1873_p10 = pnand %p1872_p5, %p1866_p4 }
  0xb6   : > { %1876 = shalt.err (!%p1873_p10)
}
  0xb7   : > { %1523 = dma.hbm_to_vmem [thread:$0]  (!%p2272_p7), %s2268_s24, 128, %s2276_s13, %s353_s6  }
  0xb8   : > { %p2515_p8 = scmp.ne.s32.totalorder %s2502_s19, 0 }
  0xb9   : > { %s2306_s2 = sand.u32 (!%p2515_p8), 1, %s1963_s10  }
  0xba   : > { %372 = sbr.rel (%p2515_p8) target bundleno = 1048 (0x418), region = 56  ;;  %s1348_s26 = sshll.u32 (!%p2515_p8), %s2306_s2, 3 }
  0xbb   : > { %s375_s29 = scalar_lea.sflag (!%p2515_p8), [#allocation3], %s2306_s2  ;;  %s378_s7 = scalar_lea.vmem (!%p2515_p8), [#allocation2], %s1348_s26 }
  0xc1   : > { %1938 = dma.done.wait (%p2243_p11), %s375_s29, 128  }
  0xc2   : > { %1940 = vsyncadd (%p2243_p11), %s375_s29, 4294967168  ;;  %p2516_p12 = scmp.ne.s32.totalorder %s2501_s18, 0 }
  0xc4   : > { %1942 = dma.done.wait (%p2516_p12), [#allocation6], 256  }
  0xc5   : > { %1944 = vsyncadd (%p2516_p12), [#allocation6], 4294967040 }
  0xc6   : > { %1946 = dma.done.wait (%p2516_p12), [#allocation9], 33280  }
  0xc7   : > { %1948 = vsyncadd (%p2516_p12), [#allocation9], 4294934016 }
  0xc8   : > { %1950 = dma.done.wait (%p2516_p12), [#allocation12], 32768  }
  0xc9   : > { %1952 = vsyncadd (%p2516_p12), [#allocation12], 4294934528  ;;  %s2326_s19 = scalar_lea.vmem [#allocation13], %s1348_s26  ;;  %p1355_p11 = scmp.ne.s32.totalorder %s1971_s12, 0 }
  0xca   : > { %v438_v0 = vld [vmem:[%s378_s7] sm:$0xff] (!%p1355_p11) }
  0xcb   : > { %437 = sbr.rel (%p1355_p11) target bundleno = 210 (0xd2), region = 84  ;;  %439 = vst [vmem:[%s2326_s19] sm:$0xff] (!%p1355_p11), %v438_v0 }
  0xd2 PF: > { %v2331_v1 = vld [vmem:[%s2326_s19] sm:$0xff]  ;;  %s1434_s17 = sshll.u32 %s1971_s12, 8  ;;  %v2000_v31 = vmov 0   ;;  %s441_s13 = scalar_lea.vmem [#allocation5], %s1971_s12 }
  0xd3   : > { %445 = vadd.xlane.f32.xlu0 %v2331_v1  ;;  %v449_v2 = vmul.f32 %v2331_v1, %v2331_v1  ;;  %s2337_s18 = scalar_lea.vmem [#allocation8], %s1434_s17  ;;  %s2343_s24 = scalar_lea.vmem [#allocation11], %s1434_s17  ;;  %792 = vmatprep.mubr.bf16.mxu0 %v2000_v31  ;;  %v1356_v48 = vld [vmem:[%s441_s13] ss:$0 sm:$0xff] }
  0xd4   : > { %v1615_v3 = vld [vmem:[%s2337_s18 + $0x4] ss:$16 sps:$4 sm:$0xff]   ;;  %v1617_v4 = vld [vmem:[%s2337_s18 + $0xc] ss:$16 sps:$4 sm:$0xff]   ;;  %v1619_v5 = vld [vmem:[%s2337_s18] ss:$16 sps:$4 sm:$0xff]   ;;  %833 = vmatprep.mubr.bf16.mxu1 %v2000_v31 }
  0xd5   : > { %760 = vmatprep.subr.bf16.mxu0 %v1615_v3  ;;  %801 = vmatprep.subr.bf16.mxu1 %v1617_v4  ;;  %v1620_v6 = vld [vmem:[%s2337_s18 + $0x8] ss:$16 sps:$4 sm:$0xff]   ;;  %v1621_v7 = vld [vmem:[%s2337_s18 + $0x24] ss:$16 sps:$4 sm:$0xff]   ;;  %v1623_v8 = vld [vmem:[%s2337_s18 + $0x2c] ss:$16 sps:$4 sm:$0xff]  }
  0xd6   : > { %761 = vmatpush1.bf16.msra.mxu0 %v1619_v5  ;;  %802 = vmatpush1.bf16.msra.mxu1 %v1620_v6  ;;  %v1625_v9 = vld [vmem:[%s2337_s18 + $0x20] ss:$16 sps:$4 sm:$0xff]   ;;  %v1626_v10 = vld [vmem:[%s2337_s18 + $0x28] ss:$16 sps:$4 sm:$0xff]   ;;  %v1627_v11 = vld [vmem:[%s2337_s18 + $0x44] ss:$16 sps:$4 sm:$0xff]  }
  0xd7   : > { %450 = vadd.xlane.f32.xlu0 %v449_v2  ;;  %762 = vmatprep.subr.bf16.mxu0 %v1621_v7  ;;  %v1629_v12 = vld [vmem:[%s2337_s18 + $0x4c] ss:$16 sps:$4 sm:$0xff]   ;;  %v1631_v13 = vld [vmem:[%s2337_s18 + $0x40] ss:$16 sps:$4 sm:$0xff]   ;;  %v1632_v14 = vld [vmem:[%s2337_s18 + $0x48] ss:$16 sps:$4 sm:$0xff]  }
  0xd8   : > { %803 = vmatprep.subr.bf16.mxu1 %v1623_v8  ;;  %v1633_v15 = vld [vmem:[%s2337_s18 + $0x64] ss:$16 sps:$4 sm:$0xff]   ;;  %v1635_v16 = vld [vmem:[%s2337_s18 + $0x6c] ss:$16 sps:$4 sm:$0xff]   ;;  %v1637_v17 = vld [vmem:[%s2337_s18 + $0x60] ss:$16 sps:$4 sm:$0xff]  }
  0xd9   : > { %v1638_v18 = vld [vmem:[%s2337_s18 + $0x68] ss:$16 sps:$4 sm:$0xff]   ;;  %v1639_v19 = vld [vmem:[%s2337_s18 + $0x84] ss:$16 sps:$4 sm:$0xff]   ;;  %v1641_v20 = vld [vmem:[%s2337_s18 + $0x8c] ss:$16 sps:$4 sm:$0xff]  }
  0xda   : > { %763 = vmatpush1.bf16.msra.mxu0 %v1625_v9  ;;  %804 = vmatpush1.bf16.msra.mxu1 %v1626_v10  ;;  %v1643_v21 = vld [vmem:[%s2337_s18 + $0x80] ss:$16 sps:$4 sm:$0xff]   ;;  %v1644_v22 = vld [vmem:[%s2337_s18 + $0x88] ss:$16 sps:$4 sm:$0xff]   ;;  %v1645_v23 = vld [vmem:[%s2337_s18 + $0xa4] ss:$16 sps:$4 sm:$0xff]  }
  0xdb   : > { %764 = vmatprep.subr.bf16.mxu0 %v1627_v11  ;;  %805 = vmatprep.subr.bf16.mxu1 %v1629_v12  ;;  %v1647_v24 = vld [vmem:[%s2337_s18 + $0xac] ss:$16 sps:$4 sm:$0xff]   ;;  %v1649_v25 = vld [vmem:[%s2337_s18 + $0xa0] ss:$16 sps:$4 sm:$0xff]   ;;  %v1650_v26 = vld [vmem:[%s2337_s18 + $0xa8] ss:$16 sps:$4 sm:$0xff]  }
  0xdc   : > { %v1651_v27 = vld [vmem:[%s2337_s18 + $0xc4] ss:$16 sps:$4 sm:$0xff]   ;;  %v1653_v28 = vld [vmem:[%s2337_s18 + $0xcc] ss:$16 sps:$4 sm:$0xff]   ;;  %v1655_v29 = vld [vmem:[%s2337_s18 + $0xc0] ss:$16 sps:$4 sm:$0xff]  }
  0xdd   : > { %v1656_v30 = vld [vmem:[%s2337_s18 + $0xc8] ss:$16 sps:$4 sm:$0xff]   ;;  %v1657_v32 = vld [vmem:[%s2337_s18 + $0xe4] ss:$16 sps:$4 sm:$0xff]   ;;  %v1659_v33 = vld [vmem:[%s2337_s18 + $0xec] ss:$16 sps:$4 sm:$0xff]  }
  0xde   : > { %765 = vmatpush1.bf16.msra.mxu0 %v1631_v13  ;;  %806 = vmatpush1.bf16.msra.mxu1 %v1632_v14  ;;  %v1661_v34 = vld [vmem:[%s2337_s18 + $0xe0] ss:$16 sps:$4 sm:$0xff]   ;;  %v1662_v35 = vld [vmem:[%s2337_s18 + $0xe8] ss:$16 sps:$4 sm:$0xff]   ;;  %s443_s8 = scalar_lea.vmem [#allocation7], %s1971_s12  ;;  %s1361_s6 = sshll.u32 %s1971_s12, 2 }
  0xdf   : > { %766 = vmatprep.subr.bf16.mxu0 %v1633_v15  ;;  %807 = vmatprep.subr.bf16.mxu1 %v1635_v16  ;;  %v1663_v36 = vld [vmem:[%s2343_s24 + $0x40] sm:$0xff]   ;;  %v1667_v56 = vld [vmem:[%s2343_s24 + $0x48] sm:$0xff]   ;;  %v1671_v60 = vld [vmem:[%s2343_s24 + $0x50] sm:$0xff]   ;;  %s577_s27 = scalar_lea.vmem [#allocation10], %s1361_s6  ;;  %s2517_s21 = sld [smem:[#allocation22_spill]] }
  0xe0   : > { %v1664_v37 = vld [vmem:[%s2343_s24 + $0xc0] sm:$0xff]   ;;  %v1668_v57 = vld [vmem:[%s2343_s24 + $0xc8] sm:$0xff]   ;;  %v1672_v61 = vld [vmem:[%s2343_s24 + $0xd0] sm:$0xff]   ;;  %p1427_p4 = scmp.ne.s32.totalorder %s1971_s12, 7 }
  0xe1   : > { %v1357_v50 = vld [vmem:[%s443_s8] ss:$0 sm:$0xff]  ;;  %v1669_v58 = vld [vmem:[%s2343_s24 + $0x8] sm:$0xff]   ;;  %v1673_v62 = vld [vmem:[%s2343_s24 + $0x10] sm:$0xff]   ;;  %s2518_s7 = sld [smem:[#allocation23_spill]] (!%p1427_p4) }
  0xe2   : > { %767 = vmatpush1.bf16.msra.mxu0 %v1637_v17  ;;  %808 = vmatpush1.bf16.msra.mxu1 %v1638_v18  ;;  %v1665_v53 = vld [vmem:[%s2343_s24] sm:$0xff]   ;;  %v1670_v59 = vld [vmem:[%s2343_s24 + $0x88] sm:$0xff]   ;;  %v1674_v63 = vld [vmem:[%s2343_s24 + $0x90] sm:$0xff]  }
  0xe3   : > { %768 = vmatprep.subr.bf16.mxu0 %v1639_v19  ;;  %809 = vmatprep.subr.bf16.mxu1 %v1641_v20  ;;  %v1666_v54 = vld [vmem:[%s2343_s24 + $0x80] sm:$0xff]   ;;  %v1675_v0 = vld [vmem:[%s2343_s24 + $0x58] sm:$0xff]   ;;  %v1683_v9 = vld [vmem:[%s2343_s24 + $0x68] sm:$0xff]  }
  0xe4   : > { %v1676_v2 = vld [vmem:[%s2343_s24 + $0xd8] sm:$0xff]   ;;  %v1679_v5 = vld [vmem:[%s2343_s24 + $0x60] sm:$0xff]   ;;  %v1684_v10 = vld [vmem:[%s2343_s24 + $0xe8] sm:$0xff]  }
  0xe5   : > { %v1677_v3 = vld [vmem:[%s2343_s24 + $0x18] sm:$0xff]   ;;  %v1680_v6 = vld [vmem:[%s2343_s24 + $0xe0] sm:$0xff]   ;;  %v1685_v11 = vld [vmem:[%s2343_s24 + $0x28] sm:$0xff]   ;;  %s866_s26 = scalar_lea.vmem %s2517_s21, %s1971_s12 }
  0xe6   : > { %769 = vmatpush1.bf16.msra.mxu0 %v1643_v21  ;;  %810 = vmatpush1.bf16.msra.mxu1 %v1644_v22  ;;  %v1678_v4 = vld [vmem:[%s2343_s24 + $0x98] sm:$0xff]   ;;  %v1681_v7 = vld [vmem:[%s2343_s24 + $0x20] sm:$0xff]   ;;  %v1686_v12 = vld [vmem:[%s2343_s24 + $0xa8] sm:$0xff]   ;;  %v580_v21 = vlaneseq }
  0xe7   : > { %770 = vmatprep.subr.bf16.mxu0 %v1645_v23  ;;  %811 = vmatprep.subr.bf16.mxu1 %v1647_v24  ;;  %v1682_v8 = vld [vmem:[%s2343_s24 + $0xa0] sm:$0xff]   ;;  %v1687_v13 = vld [vmem:[%s2343_s24 + $0x70] sm:$0xff]   ;;  %v1691_v17 = vld [vmem:[%s2343_s24 + $0x78] sm:$0xff]  }
  0xe8   : > { %v1688_v14 = vld [vmem:[%s2343_s24 + $0xf0] sm:$0xff]   ;;  %v1692_v18 = vld [vmem:[%s2343_s24 + $0xf8] sm:$0xff]   ;;  %v581_v22 = vshrl.u32 %v580_v21, 7 }
  0xe9   : > { %v1689_v15 = vld [vmem:[%s2343_s24 + $0x30] sm:$0xff]   ;;  %v1693_v19 = vld [vmem:[%s2343_s24 + $0x38] sm:$0xff]  }
  0xea   : > { %771 = vmatpush1.bf16.msra.mxu0 %v1649_v25  ;;  %812 = vmatpush1.bf16.msra.mxu1 %v1650_v26  ;;  %v1690_v16 = vld [vmem:[%s2343_s24 + $0xb0] sm:$0xff]   ;;  %v1694_v20 = vld [vmem:[%s2343_s24 + $0xb8] sm:$0xff]   ;;  %v582_v23 = vsub.s32 0, %v581_v22  ;;  %v590_v24 = vsub.s32 2, %v581_v22  ;;  %v578_v25 = vld [vmem:[%s577_s27] sm:$0xf] }
  0xeb   : > { %772 = vmatprep.subr.bf16.mxu0 %v1651_v27  ;;  %813 = vmatprep.subr.bf16.mxu1 %v1653_v28  ;;  %v586_v26 = vsub.s32 1, %v581_v22  ;;  %v594_v27 = vsub.s32 3, %v581_v22  ;;  %s2519_s24 = sld [smem:[#allocation24_spill]] (!%p1427_p4) }
  0xec   : > { %v583_v28 = vrot.slane %v578_v25, %v582_v23 }
  0xed   : > { %v595_v31 = vrot.slane %v578_v25, %v594_v27 }
  0xee   : > { %773 = vmatpush1.bf16.msra.mxu0 %v1655_v29  ;;  %814 = vmatpush1.bf16.msra.mxu1 %v1656_v30  ;;  %v591_v29 = vrot.slane %v578_v25, %v590_v24  ;;  %v587_v30 = vrot.slane %v578_v25, %v586_v26 }
  0xef   : > { %774 = vmatprep.subr.bf16.mxu0 %v1657_v32  ;;  %815 = vmatprep.subr.bf16.mxu1 %v1659_v33 }
  0xf2   : > { %775 = vmatpush1.bf16.msra.mxu0 %v1661_v34  ;;  %816 = vmatpush1.bf16.msra.mxu1 %v1662_v35 }
  0xf3   : > { %1436 = vmatprep.subr.bf16.mxu0 %v1663_v36  ;;  %1458 = vmatprep.subr.bf16.mxu1 %v1664_v37 }
 0x160   : > { %v446_v38 = vpop.xlane.xlu0 %445 }
 0x161   : > { %v448_v39 = vmul.f32 0.0078125, %v446_v38 }
 0x163   : > { %v453_v41 = vmul.f32 %v448_v39, %v448_v39  ;;  %v456_v46 = vsub.f32 %v2331_v1, %v448_v39 }
 0x164   : > { %v451_v40 = vpop.xlane.xlu0 %450 }
 0x165   : > { %v452_v42 = vmul.f32 0.0078125, %v451_v40 }
 0x167   : > { %v454_v43 = vsub.f32 %v452_v42, %v453_v41 }
 0x169   : > { %v455_v44 = vmax.f32 %v454_v43, 0.0 }
 0x16b   : > { %v457_v45 = vadd.f32 1e-05, %v455_v44 }
 0x16d   : > { %1695 = vrsqrt.f32 %v457_v45 }
 0x177   : > { %v1696_v47 = vpop.eup %1695 }
 0x178   : > { %v459_v49 = vmul.f32 %v1696_v47, %v456_v46 }
 0x17a   : > { %v466_v51 = vmul.f32 %v1356_v48, %v459_v49 }
 0x17c   : > { %v473_v52 = vadd.f32 %v1357_v50, %v466_v51 }
 0x17e   : > { %v575_v55 = vpack.c.bf16 %v473_v52, %v473_v52 }
 0x180   : > { %793 = vmatmul.mubr.bf16.vlgmr.msra.gmra.mrb[0].mxu0 %v575_v55  ;;  %834 = vmatmul.mubr.bf16.vlgmr.msra.gmra.mrb[0].mxu1 %v575_v55 }
 0x181   : > { %1437 = vmatpush3.bf16.msra.mxu0 %v1665_v53  ;;  %1459 = vmatpush3.bf16.msra.mxu1 %v1666_v54 }
 0x182   : > { %1438 = vmatprep.subr.bf16.mxu0 %v1667_v56  ;;  %1460 = vmatprep.subr.bf16.mxu1 %v1668_v57 }
 0x185   : > { %1439 = vmatpush3.bf16.msra.mxu0 %v1669_v58  ;;  %1461 = vmatpush3.bf16.msra.mxu1 %v1670_v59 }
 0x186   : > { %1440 = vmatprep.subr.bf16.mxu0 %v1671_v60  ;;  %1462 = vmatprep.subr.bf16.mxu1 %v1672_v61 }
 0x189   : > { %1441 = vmatpush3.bf16.msra.mxu0 %v1673_v62  ;;  %1463 = vmatpush3.bf16.msra.mxu1 %v1674_v63 }
 0x18a   : > { %1442 = vmatprep.subr.bf16.mxu0 %v1675_v0  ;;  %1464 = vmatprep.subr.bf16.mxu1 %v1676_v2 }
 0x18d   : > { %1443 = vmatpush3.bf16.msra.mxu0 %v1677_v3  ;;  %1465 = vmatpush3.bf16.msra.mxu1 %v1678_v4 }
 0x18e   : > { %1444 = vmatprep.subr.bf16.mxu0 %v1679_v5  ;;  %1466 = vmatprep.subr.bf16.mxu1 %v1680_v6 }
 0x191   : > { %1445 = vmatpush3.bf16.msra.mxu0 %v1681_v7  ;;  %1467 = vmatpush3.bf16.msra.mxu1 %v1682_v8  ;;  %v1394_v7 = vld [vmem:[%s866_s26] ss:$0 sm:$0xff] }
 0x192   : > { %1446 = vmatprep.subr.bf16.mxu0 %v1683_v9  ;;  %1468 = vmatprep.subr.bf16.mxu1 %v1684_v10 }
 0x195   : > { %1447 = vmatpush3.bf16.msra.mxu0 %v1685_v11  ;;  %1469 = vmatpush3.bf16.msra.mxu1 %v1686_v12 }
 0x196   : > { %1448 = vmatprep.subr.bf16.mxu0 %v1687_v13  ;;  %1470 = vmatprep.subr.bf16.mxu1 %v1688_v14 }
 0x199   : > { %1449 = vmatpush3.bf16.msra.mxu0 %v1689_v15  ;;  %1471 = vmatpush3.bf16.msra.mxu1 %v1690_v16 }
 0x19a   : > { %1450 = vmatprep.subr.bf16.mxu0 %v1691_v17  ;;  %1472 = vmatprep.subr.bf16.mxu1 %v1692_v18 }
 0x19d   : > { %1451 = vmatpush3.bf16.msra.mxu0 %v1693_v19  ;;  %1473 = vmatpush3.bf16.msra.mxu1 %v1694_v20 }
 0x253   : > { %v794_v32 = vpop.f32.mrb[0].mxu0  ;;  %v835_v33 = vpop.f32.mrb[0].mxu1 }
 0x254   : > { %v795_v34 = vadd.f32 %v794_v32, %v583_v28  ;;  %v836_v35 = vadd.f32 %v835_v33, %v591_v29  ;;  %v796_v36 = vpop.f32.mrb[1].mxu0  ;;  %v837_v37 = vpop.f32.mrb[1].mxu1  ;;  %v1429_v32 = vld [vmem:[%s2519_s24] ss:$0 sm:$0xff] (!%p1427_p4) }
 0x255   : > { %v797_v38 = vadd.f32 %v796_v36, %v587_v30  ;;  %v838_v39 = vadd.f32 %v837_v37, %v595_v31  ;;  %v798_v40 = vpop.f32.mrb[2].mxu0  ;;  %v839_v41 = vpop.f32.mrb[2].mxu1  ;;  %v1428_v30 = vld [vmem:[%s2518_s7] ss:$0 sm:$0xff] (!%p1427_p4) }
 0x256   : > { %v846_v42 = vmul.f32 0.70710677, %v795_v34  ;;  %v848_v43 = vmul.f32 0.70710677, %v836_v35  ;;  %v799_v46 = vpop.f32.mrb[3].mxu0  ;;  %v840_v47 = vpop.f32.mrb[3].mxu1 }
 0x257   : > { %v847_v44 = vmul.f32 0.70710677, %v797_v38  ;;  %v849_v45 = vmul.f32 0.70710677, %v838_v39  ;;  %v842_v52 = vmul.f32 0.5, %v795_v34  ;;  %v844_v55 = vmul.f32 0.5, %v836_v35 }
 0x258   : > { %1697 = verf.f32 %v846_v42  ;;  %v843_v56 = vmul.f32 0.5, %v797_v38  ;;  %v845_v59 = vmul.f32 0.5, %v838_v39 }
 0x259   : > { %1699 = verf.f32 %v848_v43 }
 0x25a   : > { %1701 = verf.f32 %v847_v44 }
 0x25b   : > { %1703 = verf.f32 %v849_v45 }
 0x262   : > { %v1698_v48 = vpop.eup %1697 }
 0x263   : > { %v1700_v49 = vpop.eup %1699  ;;  %v854_v50 = vadd.f32 1.0, %v1698_v48 }
 0x264   : > { %v1702_v51 = vpop.eup %1701  ;;  %v856_v53 = vadd.f32 1.0, %v1700_v49 }
 0x265   : > { %v1704_v54 = vpop.eup %1703  ;;  %v855_v57 = vadd.f32 1.0, %v1702_v51  ;;  %v858_v58 = vmul.f32 %v854_v50, %v842_v52 }
 0x266   : > { %v857_v60 = vadd.f32 1.0, %v1704_v54  ;;  %v860_v61 = vmul.f32 %v856_v53, %v844_v55 }
 0x267   : > { %v859_v62 = vmul.f32 %v855_v57, %v843_v56  ;;  %v862_v2 = vpack.c.bf16 %v858_v58, %v858_v58 }
 0x268   : > { %v861_v63 = vmul.f32 %v857_v60, %v845_v59  ;;  %v864_v4 = vpack.c.bf16 %v860_v61, %v860_v61 }
 0x269   : > { %v863_v0 = vpack.c.bf16 %v859_v62, %v859_v62 }
 0x26a   : > { %v865_v3 = vpack.c.bf16 %v861_v63, %v861_v63 }
 0x26b   : > { %1098 = vmatprep.mubr.bf16.mxu0 %v863_v0 }
 0x26c   : > { %1138 = vmatprep.mubr.bf16.mxu1 %v865_v3  ;;  %1099 = vmatmul.mubr.bf16.vlgmr.msra.gmra.mrb[4].mxu0 %v862_v2 }
 0x26d   : > { %1139 = vmatmul.mubr.bf16.vlgmr.msra.gmra.mrb[4].mxu1 %v864_v4 }
 0x33f   : > { %v1452_v5 = vpop.f32.mrb[4].mxu0 }
 0x340   : > { %v1474_v6 = vpop.f32.mrb[4].mxu1  ;;  %v1453_v8 = vpop.f32.mrb[5].mxu0 }
 0x341   : > { %v1454_v9 = vadd.f32 %v1453_v8, %v1452_v5  ;;  %v1475_v10 = vpop.f32.mrb[5].mxu1  ;;  %v1455_v11 = vpop.f32.mrb[6].mxu0 }
 0x342   : > { %v1476_v12 = vadd.f32 %v1475_v10, %v1474_v6  ;;  %v1477_v13 = vpop.f32.mrb[6].mxu1  ;;  %v1456_v14 = vpop.f32.mrb[7].mxu0 }
 0x343   : > { %v1101_v15 = vadd.f32 %v1454_v9, %v1394_v7  ;;  %v1478_v16 = vpop.f32.mrb[7].mxu1  ;;  %1151 = sbr.rel (%p1427_p4) target bundleno = 1021 (0x3fd), region = 88 }
 0x345   : > { %v1141_v17 = vadd.f32 %v1476_v12, %v1101_v15 }
 0x347   : > { %v1146_v18 = vadd.f32 %v1141_v17, %v2331_v1 }
 0x349   : > { %1147 = vst [vmem:[%s2326_s19] sm:$0xff] %v1146_v18 }
 0x350   : > { %v1152_v19 = vld [vmem:[%s2326_s19] sm:$0xff] }
 0x351   : > { %1155 = vadd.xlane.f32.xlu0 %v1152_v19  ;;  %v1158_v20 = vmul.f32 %v1152_v19, %v1152_v19 }
 0x355   : > { %1159 = vadd.xlane.f32.xlu0 %v1158_v20 }
 0x3de   : > { %v1156_v21 = vpop.xlane.xlu0 %1155 }
 0x3df   : > { %v1157_v22 = vmul.f32 0.0078125, %v1156_v21 }
 0x3e1   : > { %v1162_v24 = vmul.f32 %v1157_v22, %v1157_v22  ;;  %v1165_v1 = vsub.f32 %v1152_v19, %v1157_v22 }
 0x3e2   : > { %v1160_v23 = vpop.xlane.xlu0 %1159 }
 0x3e3   : > { %v1161_v25 = vmul.f32 0.0078125, %v1160_v23 }
 0x3e5   : > { %v1163_v26 = vsub.f32 %v1161_v25, %v1162_v24 }
 0x3e7   : > { %v1164_v27 = vmax.f32 %v1163_v26, 0.0 }
 0x3e9   : > { %v1166_v28 = vadd.f32 1e-05, %v1164_v27 }
 0x3eb   : > { %1705 = vrsqrt.f32 %v1166_v28 }
 0x3f5   : > { %v1706_v29 = vpop.eup %1705 }
 0x3f6   : > { %v1168_v31 = vmul.f32 %v1706_v29, %v1165_v1 }
 0x3f8   : > { %v1175_v33 = vmul.f32 %v1428_v30, %v1168_v31 }
 0x3fa   : > { %v1182_v34 = vadd.f32 %v1429_v32, %v1175_v33 }
 0x3fc   : > { %1183 = vst [vmem:[%s2326_s19] sm:$0xff] %v1182_v34 }
 0x3fd PF: > { %s2520_s13 = sld [smem:[#allocation19_spill]]  ;;  %s2521_s20 = sld [smem:[#allocation25_spill]] }
 0x3fe   : > { %s1198_s21 = sshll.u32 %s2326_s19, 4  ;;  %s1185_s26 = scalar_lea.sflag [#allocation4], %s2306_s2  ;;  %s1199_s21 = int_to_ptr.vmem [resolvable:$true] %s1198_s21 }
 0x3ff   : > { %s1877_s29 = scalar_lea.vmem %s1199_s21, 128  ;;  %p2522_p3 = scmp.ne.s32.totalorder %s2512_s28, 0 }
 0x400   : > { %p1878_p7 = scmp.ne.s32.totalorder %s1199_s21, %s1877_s29  ;;  %s2001_s12 = smov [#allocation13]  }
 0x401   : > { %s1881_s7 = sshll.u32 %s2001_s12, 4  ;;  %s1882_s7 = int_to_ptr.vmem [resolvable:$false] %s1881_s7 }
 0x402   : > { %p1879_p13 = pnand %p1878_p7, %p2522_p3  ;;  %s1883_s17 = scalar_lea.vmem %s1882_s7, 256 }
 0x403   : > { %s1431_s8 = sshll.u32 %s2520_s13, 7  ;;  %p1884_p2 = scmp.lt.s32.totalorder %s1199_s21, %s1882_s7 }
 0x404   : > { %s2428_s23 = scalar_lea.hbm %s2521_s20, %s1431_s8  ;;  %p1880_p0 = pneg %p1879_p13 }
 0x405   : > { %p1885_p1 = scmp.lt.s32.totalorder %s1883_s17, %s1877_s29 }
 0x407   : > { %p1886_p6 = por %p1885_p1, %p1884_p2 }
 0x409   : > { %p1887_p9 = pnand %p1886_p6, %p1880_p0 }
 0x40b   : > { %1890 = shalt.err (!%p1887_p9)
}
 0x40c   : > { %s1891_s2 = scalar_lea.hbm %s2428_s23, 128  ;;  %s1895_s24 = scalar_lea.hbm %s2521_s20, 256 }
 0x40d   : > { %p1892_p5 = scmp.ne.s32.totalorder %s2428_s23, %s1891_s2  ;;  %p1896_p12 = scmp.lt.u32.totalorder %s2428_s23, %s2521_s20 }
 0x40e   : > { %p1897_p11 = scmp.lt.u32.totalorder %s1895_s24, %s1891_s2  ;;  %p1899_p7 = scmp.lt.u32.totalorder %s1891_s2, %s2428_s23 }
 0x40f   : > { %p1893_p10 = pnand %p1892_p5, %p2522_p3 }
 0x410   : > { %p1898_p4 = por %p1897_p11, %p1896_p12 }
 0x411   : > { %p1894_p8 = pneg %p1893_p10 }
 0x412   : > { %p1900_p13 = por %p1899_p7, %p1898_p4 }
 0x414   : > { %p1901_p0 = pnand %p1900_p13, %p1894_p8 }
 0x416   : > { %1904 = shalt.err (!%p1901_p0)
}
 0x417   : > { %1502 = dma.vmem_to_hbm [thread:$0]  (%p2522_p3), %s1199_s21, 128, %s2428_s23, %s1185_s26  }
 0x418 PF: > { %p1539_p2 = scmp.ge.s32.totalorder %s1987_s16, 2  ;;  %s1210_s6 = sand.u32 1, %s1959_s30  }
 0x419   : > { %p2523_p1 = scmp.ne.s32.totalorder %s2513_s9, 0  ;;  %s1211_s27 = scalar_lea.sflag [#allocation4], %s1210_s6 }
 0x41b   : > { %p1525_p6 = pnand %p1539_p2, %p2523_p1 }
 0x41d   : > { %1954 = dma.done.wait (!%p1525_p6), %s1211_s27, 128  }
 0x41e   : > { %1956 = vsyncadd (!%p1525_p6), %s1211_s27, 4294967168  ;;  %s28_s16 = sadd.s32 1, %s1987_s16   ;;  %s2524_s30 = smov %s1963_s10 }
 0x41f   : > { %p25_p9 = scmp.ge.s32.totalorder %s28_s16, 18   ;;  %s2525_s10 = smov %s1967_s11 }
 0x420   : > { %s2526_s11 = smov %s2263_s25  ;;  %s2527_s12 = smov %s1979_s14 }
 0x421   : > { %s2528_s13 = smov %s1983_s15  ;;  %s2529_s14 = smov %s2532_s1 }
 0x422   : > { %s2530_s15 = smov %s2536_s22  ;;  %27 = sbr.rel (!%p25_p9) target bundleno = 17 (0x11), region = 135 }
 0x429   :  { %1216 = vsyncpa [#allocation3], 1 }
 0x42a   :  { %1218 = vsyncpa [#allocation3 + $0x1], 1 }
 0x42b   :  { %1219 = vsyncpa [#allocation6], 1 }
 0x42c   :  { %1220 = vsyncpa [#allocation9], 1 }
 0x42d   :  { %1221 = vsyncpa [#allocation12], 1 }
 0x42e   :  { %1222 = vsyncpa [#allocation4], 1 }
 0x42f   :  { %1224 = vsyncpa [#allocation4 + $0x1], 1 }

</bundles_post_ra>
